<compile_context>
chip_gen: v7x
topology: tpu7x:2x2x1
jax: 0.10.0
libtpu: 0.0.40
codegen_flags: <defaults>
</compile_context>

<pallas_src>
import functools

import jax
import jax.numpy as jnp
from jax.experimental import pallas as pl
from jax.experimental.pallas import tpu as pltpu


def _round_up(x, m):
    return (x + m - 1) // m * m


def _normalize_kernel(x1_ref, x2_ref, n1_ref, n2_ref):
    eps = jnp.float32(1e-12)                    # F.normalize default eps
    x1 = x1_ref[...].astype(jnp.float32)
    x2 = x2_ref[...].astype(jnp.float32)
    inv1 = 1.0 / jnp.maximum(
        jnp.sqrt(jnp.sum(x1 * x1, axis=1, keepdims=True)), eps)
    inv2 = 1.0 / jnp.maximum(
        jnp.sqrt(jnp.sum(x2 * x2, axis=1, keepdims=True)), eps)
    n1_ref[...] = x1 * inv1
    n2_ref[...] = x2 * inv2


def _loss_kernel(n1r_ref, n2r_ref, n1c_ref, n2c_ref, part_ref,
                 rs1_acc, rs2_acc, *, batch, tm, tn, inv_t,
                 mask_cols, mask_rows):
    i = pl.program_id(0)
    j = pl.program_id(1)
    inv_t_f = jnp.float32(inv_t)

    @pl.when(j == 0)
    def _():
        rs1_acc[...] = jnp.zeros_like(rs1_acc)
        rs2_acc[...] = jnp.zeros_like(rs2_acc)

    n1r = n1r_ref[...]                           # [tm, Dp]  rows of first half
    n2r = n2r_ref[...]                           # [tm, Dp]  rows of second half
    # Fold 1/T into the column tiles so the [tm, tn] similarity blocks need no
    # extra rescale before exp.
    n1c = n1c_ref[...] * inv_t_f                 # [tn, Dp]  columns (first half)
    n2c = n2c_ref[...] * inv_t_f                 # [tn, Dp]  columns (second half)

    dims = (((1,), (1,)), ((), ()))              # contract feature axis; no .T
    s11 = jax.lax.dot_general(n1r, n1c, dims, preferred_element_type=jnp.float32)
    s12 = jax.lax.dot_general(n1r, n2c, dims, preferred_element_type=jnp.float32)
    s21 = jax.lax.dot_general(n2r, n1c, dims, preferred_element_type=jnp.float32)
    s22 = jax.lax.dot_general(n2r, n2c, dims, preferred_element_type=jnp.float32)

    e1 = jnp.exp(s11) + jnp.exp(s12)             # rows from n1 half
    e2 = jnp.exp(s21) + jnp.exp(s22)             # rows from n2 half
    if mask_cols:
        col_ids = j * tn + jax.lax.broadcasted_iota(jnp.int32, (1, tn), 1)
        col_valid = (col_ids < batch).astype(jnp.float32)
        e1 = e1 * col_valid
        e2 = e2 * col_valid
    rs1_acc[...] += jnp.sum(e1, axis=1, keepdims=True)
    rs2_acc[...] += jnp.sum(e2, axis=1, keepdims=True)

    @pl.when(j == pl.num_programs(1) - 1)
    def _():
        # Remove the diagonal self-similarity exp(<n_i, n_i>/T) (== exp(1/T)
        # except for all-zero input rows, matching masked_select exactly).
        diag1 = jnp.exp(jnp.sum(n1r * n1r, axis=1, keepdims=True) * inv_t_f)
        diag2 = jnp.exp(jnp.sum(n2r * n2r, axis=1, keepdims=True) * inv_t_f)
        denom1 = rs1_acc[...] - diag1
        denom2 = rs2_acc[...] - diag2
        pos_logit = jnp.sum(n1r * n2r, axis=1, keepdims=True) * inv_t_f
        # -log(pos / denom) == log(denom) - <n1, n2>/T
        if mask_rows:
            row_ids = i * tm + jax.lax.broadcasted_iota(jnp.int32, (tm, 1), 0)
            row_valid = row_ids < batch
            denom1 = jnp.where(row_valid, denom1, 1.0)
            denom2 = jnp.where(row_valid, denom2, 1.0)
            rvf = row_valid.astype(jnp.float32)
            losses = ((jnp.log(denom1) - pos_logit)
                      + (jnp.log(denom2) - pos_logit)) * rvf
        else:
            losses = ((jnp.log(denom1) - pos_logit)
                      + (jnp.log(denom2) - pos_logit))
        part_ref[0, 0] = jnp.sum(losses)


def contrastive_loss(x1, x2, temperature=0.5, block_size=256):
    assert x1.shape == x2.shape and x1.ndim == 2
    B, D = x1.shape
    Dp = _round_up(D, 128)                       # lane-dense feature axis
    blk = min(block_size, _round_up(B, 8))       # row & column tile (MXU-aligned)
    Bp = _round_up(B, blk)
    nblk = Bp // blk

    x1p = jnp.pad(x1.astype(jnp.float32), ((0, Bp - B), (0, Dp - D)))
    x2p = jnp.pad(x2.astype(jnp.float32), ((0, Bp - B), (0, Dp - D)))

    # Pass 1: row-tiled L2 normalization (O(B*D)); padded rows stay zero.
    n1, n2 = pl.pallas_call(
        _normalize_kernel,
        out_shape=(jax.ShapeDtypeStruct((Bp, Dp), jnp.float32),
                   jax.ShapeDtypeStruct((Bp, Dp), jnp.float32)),
        grid=(nblk,),
        in_specs=[pl.BlockSpec((blk, Dp), lambda i: (i, 0)),
                  pl.BlockSpec((blk, Dp), lambda i: (i, 0))],
        out_specs=(pl.BlockSpec((blk, Dp), lambda i: (i, 0)),
                   pl.BlockSpec((blk, Dp), lambda i: (i, 0))),
        compiler_params=pltpu.CompilerParams(
            dimension_semantics=("parallel",)),
    )(x1p, x2p)

    # Pass 2: tiled similarity / off-diagonal row sums / per-row-block loss.
    kernel = functools.partial(
        _loss_kernel, batch=B, tm=blk, tn=blk,
        inv_t=float(1.0 / temperature),
        mask_cols=(Bp != B), mask_rows=(Bp != B))
    partial_losses = pl.pallas_call(
        kernel,
        out_shape=jax.ShapeDtypeStruct((nblk, 1), jnp.float32),
        grid=(nblk, nblk),
        in_specs=[
            pl.BlockSpec((blk, Dp), lambda i, j: (i, 0)),   # n1 row tile
            pl.BlockSpec((blk, Dp), lambda i, j: (i, 0)),   # n2 row tile
            pl.BlockSpec((blk, Dp), lambda i, j: (j, 0)),   # n1 column tile
            pl.BlockSpec((blk, Dp), lambda i, j: (j, 0)),   # n2 column tile
        ],
        out_specs=pl.BlockSpec((1, 1), lambda i, j: (i, 0),
                               memory_space=pltpu.SMEM),
        scratch_shapes=[pltpu.VMEM((blk, 1), jnp.float32),
                        pltpu.VMEM((blk, 1), jnp.float32)],
        compiler_params=pltpu.CompilerParams(
            dimension_semantics=("parallel", "arbitrary")),
    )(n1, n2, n1, n2)

    return jnp.sum(partial_losses) / jnp.float32(2 * B)


def _reference(x1, x2, temperature=0.5):
    # Pure-JAX reference of the PyTorch forward, for a sanity check.
    eps = 1e-12
    n1 = x1 / jnp.maximum(jnp.linalg.norm(x1, axis=1, keepdims=True), eps)
    n2 = x2 / jnp.maximum(jnp.linalg.norm(x2, axis=1, keepdims=True), eps)
    b = x1.shape[0]
    out = jnp.concatenate([n1, n2], axis=0)
    sim = jnp.exp(out @ out.T / temperature)
    mask = 1.0 - jnp.eye(2 * b)
    row_sum = jnp.sum(sim * mask, axis=1)
    pos = jnp.exp(jnp.sum(n1 * n2, axis=1) / temperature)
    pos = jnp.concatenate([pos, pos], axis=0)
    return jnp.mean(-jnp.log(pos / row_sum))


if __name__ == "__main__":
    key = jax.random.PRNGKey(0)

    # Case 1: small, module-consistent shape (B=8 features of dim 32).
    k1, k2 = jax.random.split(key)
    B, D = 8, 32
    x1 = jax.random.normal(k1, (B, D), dtype=jnp.float32)
    x2 = jax.random.normal(k2, (B, D), dtype=jnp.float32)
    loss = contrastive_loss(x1, x2, temperature=0.5)
    jax.block_until_ready(loss)
    ref = _reference(x1, x2, temperature=0.5)
    assert jnp.allclose(loss, ref, rtol=1e-4, atol=1e-5), (loss, ref)

    # Case 2: non-aligned shape to exercise the padding/masking path.
    k3, k4 = jax.random.split(k1)
    B2, D2 = 13, 40
    y1 = jax.random.normal(k3, (B2, D2), dtype=jnp.float32)
    y2 = jax.random.normal(k4, (B2, D2), dtype=jnp.float32)
    loss2 = contrastive_loss(y1, y2, temperature=0.5)
    jax.block_until_ready(loss2)
    ref2 = _reference(y1, y2, temperature=0.5)
    assert jnp.allclose(loss2, ref2, rtol=1e-4, atol=1e-5), (loss2, ref2)

    print("KERNEL_OK")
</pallas_src>

<mosaic_0001>
module attributes {stable_mosaic.version = 11 : i64} {
  func.func @_normalize_kernel(%arg0: i32, %arg1: memref<8x128xf32, #tpu.memory_space<vmem>>, %arg2: memref<8x128xf32, #tpu.memory_space<vmem>>, %arg3: memref<8x128xf32, #tpu.memory_space<vmem>>, %arg4: memref<8x128xf32, #tpu.memory_space<vmem>>) attributes {dimension_semantics = [#tpu.dimension_semantics<parallel>], iteration_bounds = array<i64: 1>, scalar_prefetch = 0 : i64, scratch_operands = 0 : i64, tpu.core_type = #tpu.core_type<tc>, window_params = [{transform_indices = @transform_0, window_bounds = array<i64: 8, 128>}, {transform_indices = @transform_1, window_bounds = array<i64: 8, 128>}, {transform_indices = @transform_2, window_bounds = array<i64: 8, 128>}, {transform_indices = @transform_3, window_bounds = array<i64: 8, 128>}]} {
    %c0 = arith.constant 0 : index
    %c0_0 = arith.constant 0 : index
    %0 = vector.load %arg1[%c0, %c0_0] : memref<8x128xf32, #tpu.memory_space<vmem>>, vector<8x128xf32>
    %c0_1 = arith.constant 0 : index
    %c0_2 = arith.constant 0 : index
    %1 = vector.load %arg2[%c0_1, %c0_2] : memref<8x128xf32, #tpu.memory_space<vmem>>, vector<8x128xf32>
    %2 = arith.mulf %0, %0 : vector<8x128xf32>
    %cst = arith.constant dense<0.000000e+00> : vector<8xf32>
    %3 = vector.multi_reduction <add>, %2, %cst [1] : vector<8x128xf32> to vector<8xf32>
    %4 = vector.shape_cast %3 : vector<8xf32> to vector<8x1xf32>
    %5 = math.sqrt %4 : vector<8x1xf32>
    %cst_3 = arith.constant 9.99999996E-13 : f32
    %6 = vector.broadcast %cst_3 : f32 to vector<8x1xf32>
    %7 = arith.maximumf %5, %6 : vector<8x1xf32>
    %cst_4 = arith.constant 1.000000e+00 : f32
    %8 = vector.broadcast %cst_4 : f32 to vector<8x1xf32>
    %9 = arith.divf %8, %7 : vector<8x1xf32>
    %10 = arith.mulf %1, %1 : vector<8x128xf32>
    %cst_5 = arith.constant dense<0.000000e+00> : vector<8xf32>
    %11 = vector.multi_reduction <add>, %10, %cst_5 [1] : vector<8x128xf32> to vector<8xf32>
    %12 = vector.shape_cast %11 : vector<8xf32> to vector<8x1xf32>
    %13 = math.sqrt %12 : vector<8x1xf32>
    %cst_6 = arith.constant 9.99999996E-13 : f32
    %14 = vector.broadcast %cst_6 : f32 to vector<8x1xf32>
    %15 = arith.maximumf %13, %14 : vector<8x1xf32>
    %cst_7 = arith.constant 1.000000e+00 : f32
    %16 = vector.broadcast %cst_7 : f32 to vector<8x1xf32>
    %17 = arith.divf %16, %15 : vector<8x1xf32>
    %18 = vector.broadcast %9 : vector<8x1xf32> to vector<8x128xf32>
    %19 = arith.mulf %0, %18 : vector<8x128xf32>
    %c0_8 = arith.constant 0 : index
    %c0_9 = arith.constant 0 : index
    %20 = vector.load %arg3[%c0_8, %c0_9] : memref<8x128xf32, #tpu.memory_space<vmem>>, vector<8x128xf32>
    tpu.vector_store %arg3[%c0_8, %c0_9], %19 {strides = array<i32>} : memref<8x128xf32, #tpu.memory_space<vmem>>, vector<8x128xf32>,
    %21 = vector.broadcast %17 : vector<8x1xf32> to vector<8x128xf32>
    %22 = arith.mulf %1, %21 : vector<8x128xf32>
    %c0_10 = arith.constant 0 : index
    %c0_11 = arith.constant 0 : index
    %23 = vector.load %arg4[%c0_10, %c0_11] : memref<8x128xf32, #tpu.memory_space<vmem>>, vector<8x128xf32>
    tpu.vector_store %arg4[%c0_10, %c0_11], %22 {strides = array<i32>} : memref<8x128xf32, #tpu.memory_space<vmem>>, vector<8x128xf32>,
    return
  }
  func.func @transform_0(%arg0: i32) -> (i32, i32) {
    %c0_i32 = arith.constant 0 : i32
    %c0_i32_0 = arith.constant 0 : i32
    return %arg0, %c0_i32 : i32, i32
  }
  func.func @transform_1(%arg0: i32) -> (i32, i32) {
    %c0_i32 = arith.constant 0 : i32
    %c0_i32_0 = arith.constant 0 : i32
    return %arg0, %c0_i32 : i32, i32
  }
  func.func @transform_2(%arg0: i32) -> (i32, i32) {
    %c0_i32 = arith.constant 0 : i32
    %c0_i32_0 = arith.constant 0 : i32
    return %arg0, %c0_i32 : i32, i32
  }
  func.func @transform_3(%arg0: i32) -> (i32, i32) {
    %c0_i32 = arith.constant 0 : i32
    %c0_i32_0 = arith.constant 0 : i32
    return %arg0, %c0_i32 : i32, i32
  }
}

</mosaic_0001>

<bundles_post_ra>
// kernel: tpu_custom_call.1
= control target key start
LH: loop header
LB: loop body
LE: loop exit
PB: predicated region body
PF: predicated region fallthrough
CT: control target
= control target key end

     0   :  { %9 = vsyncpa [#allocation3], 0  ;;  %s281_s0 = inlined_call_operand.hbm [shape: f32[8,128], index: 0, kind: input, shape index: {}]   ;;  %s282_s1 = inlined_call_operand.hbm [shape: f32[8,128], index: 1, kind: input, shape index: {}]   ;;  %s283_s2 = inlined_call_operand.hbm [shape: f32[8,128], index: 2, kind: output, shape index: {0}]   ;;  %s284_s3 = inlined_call_operand.hbm [shape: f32[8,128], index: 3, kind: output, shape index: {1}]  }
   0x1   :  { %10 = vsyncpa [#allocation6], 0 }
   0x2   :  { %11 = vsyncpa [#allocation4], 0 }
   0x3   :  { %12 = vsyncpa [#allocation9], 0  ;;  %s209_s12 = smov [#allocation2]   ;;  %s210_s14 = smov [#allocation5]  }
   0x4   :  { %s19_s13 = sshll.u32 %s209_s12, 4  ;;  %s29_s15 = sshll.u32 %s210_s14, 4  ;;  %s20_s13 = int_to_ptr.vmem [resolvable:$true] %s19_s13  ;;  %s30_s15 = int_to_ptr.vmem [resolvable:$true] %s29_s15 }
   0x5   :  { %s113_s18 = scalar_lea.hbm %s281_s0, 128 }
   0x6   :  { %p114_p0 = scmp.ne.s32.totalorder %s281_s0, %s113_s18  ;;  %p117_p1 = scmp.lt.u32.totalorder %s113_s18, %s281_s0 }
   0x8   :  { %p119_p2 = pnand %p117_p1, %p114_p0 }
   0xa   :  { %122 = shalt.err (!%p119_p2)
}
   0xb   :  { %s123_s23 = scalar_lea.vmem %s20_s13, 128  ;;  %p128_p4 = scmp.lt.s32.totalorder %s20_s13, %s20_s13 }
   0xc   :  { %p124_p3 = scmp.ne.s32.totalorder %s20_s13, %s123_s23  ;;  %p129_p5 = scmp.lt.s32.totalorder %s123_s23, %s123_s23 }
   0xe   :  { %p130_p6 = por %p129_p5, %p128_p4 }
  0x10   :  { %p131_p7 = pnand %p130_p6, %p124_p3 }
  0x12   :  { %134 = shalt.err (!%p131_p7)
}
  0x13   :  { %22 = dma.hbm_to_vmem [thread:$0]  %s281_s0, 128, %s20_s13, [#allocation3]  }
  0x14   :  { %s135_s28 = scalar_lea.hbm %s282_s1, 128 }
  0x15   :  { %p136_p8 = scmp.ne.s32.totalorder %s282_s1, %s135_s28  ;;  %p139_p9 = scmp.lt.u32.totalorder %s135_s28, %s282_s1 }
  0x17   :  { %p141_p10 = pnand %p139_p9, %p136_p8 }
  0x19   :  { %144 = shalt.err (!%p141_p10)
}
  0x1a   :  { %s145_s6 = scalar_lea.vmem %s30_s15, 128  ;;  %p150_p12 = scmp.lt.s32.totalorder %s30_s15, %s30_s15 }
  0x1b   :  { %p146_p11 = scmp.ne.s32.totalorder %s30_s15, %s145_s6  ;;  %p151_p13 = scmp.lt.s32.totalorder %s145_s6, %s145_s6 }
  0x1d   :  { %p152_p0 = por %p151_p13, %p150_p12 }
  0x1f   :  { %p153_p1 = pnand %p152_p0, %p146_p11 }
  0x21   :  { %156 = shalt.err (!%p153_p1)
}
  0x22   :  { %32 = dma.hbm_to_vmem [thread:$0]  %s282_s1, 128, %s30_s15, [#allocation6]  }
  0x23   :  { %201 = dma.done.wait [#allocation3], 128  }
  0x24   :  { %202 = vsyncadd [#allocation3], 4294967168 }
  0x25   :  { %203 = dma.done.wait [#allocation6], 128  }
  0x26   :  { %204 = vsyncadd [#allocation6], 4294967168  ;;  %v39_v0 = vld [vmem:[#allocation2] sm:$0xff]  ;;  %v40_v1 = vld [vmem:[#allocation5] sm:$0xff]  ;;  %s211_s1 = smov [#allocation7]   ;;  %s212_s9 = smov [#allocation8]  }
  0x27   :  { %v41_v2 = vmul.f32 %v39_v0, %v39_v0  ;;  %v54_v3 = vmul.f32 %v40_v1, %v40_v1  ;;  %s77_s8 = sshll.u32 %s211_s1, 4  ;;  %s87_s10 = sshll.u32 %s212_s9, 4  ;;  %s78_s8 = int_to_ptr.vmem [resolvable:$true] %s77_s8  ;;  %s88_s10 = int_to_ptr.vmem [resolvable:$true] %s87_s10 }
  0x28   :  { %s157_s11 = scalar_lea.vmem %s78_s8, 128  ;;  %p162_p3 = scmp.lt.s32.totalorder %s78_s8, %s78_s8 }
  0x29   :  { %42 = vadd.xlane.f32.xlu0 %v41_v2  ;;  %p158_p2 = scmp.ne.s32.totalorder %s78_s8, %s157_s11  ;;  %p163_p4 = scmp.lt.s32.totalorder %s157_s11, %s157_s11 }
  0x2b   :  { %p164_p5 = por %p163_p4, %p162_p3 }
  0x2d   :  { %55 = vadd.xlane.f32.xlu0 %v54_v3  ;;  %p165_p6 = pnand %p164_p5, %p158_p2 }
  0xb6   :  { %v43_v4 = vpop.xlane.xlu0 %42 }
  0xb7   :  { %105 = vrsqrt.f32 %v43_v4  ;;  %vm46_vm0 = vcmp.eq.f32.partialorder %v43_v4, inf  ;;  %v49_v8 = vand.u32 2147483648, %v43_v4  ;;  %vm48_vm1 = vcmp.eq.f32.partialorder %v43_v4, 0.0 }
  0xba   :  { %v56_v5 = vpop.xlane.xlu0 %55 }
  0xbb   :  { %107 = vrsqrt.f32 %v56_v5  ;;  %vm59_vm2 = vcmp.eq.f32.partialorder %v56_v5, inf  ;;  %v62_v14 = vand.u32 2147483648, %v56_v5  ;;  %vm61_vm3 = vcmp.eq.f32.partialorder %v56_v5, 0.0 }
  0xc1   :  { %v106_v6 = vpop.eup %105 }
  0xc2   :  { %v45_v7 = vmul.f32 %v106_v6, %v43_v4 }
  0xc4   :  { %v47_v9 = vsel %vm46_vm0, %v43_v4, %v45_v7 }
  0xc5   :  { %v108_v10 = vpop.eup %107  ;;  %v50_v11 = vsel %vm48_vm1, %v49_v8, %v47_v9 }
  0xc6   :  { %v51_v12 = vmax.f32 %v50_v11, 1e-12  ;;  %v58_v13 = vmul.f32 %v108_v10, %v56_v5 }
  0xc8   :  { %v60_v15 = vsel %vm59_vm2, %v56_v5, %v58_v13  ;;  %109 = vrcp.f32 %v51_v12 }
  0xc9   :  { %v63_v16 = vsel %vm61_vm3, %v62_v14, %v60_v15 }
  0xca   :  { %v64_v17 = vmax.f32 %v63_v16, 1e-12 }
  0xcc   :  { %111 = vrcp.f32 %v64_v17 }
  0xd2   :  { %v110_v18 = vpop.eup %109 }
  0xd3   :  { %v67_v19 = vmul.f32 %v110_v18, %v39_v0 }
  0xd5   :  { %68 = vst [vmem:[#allocation7] sm:$0xff] %v67_v19 }
  0xd6   :  { %v112_v20 = vpop.eup %111 }
  0xd7   :  { %168 = shalt.err (!%p165_p6)
}
  0xd8   :  { %s169_s14 = scalar_lea.hbm %s283_s2, 128 }
  0xd9   :  { %p170_p7 = scmp.ne.s32.totalorder %s283_s2, %s169_s14  ;;  %p173_p8 = scmp.lt.u32.totalorder %s169_s14, %s283_s2 }
  0xdb   :  { %p175_p9 = pnand %p173_p8, %p170_p7 }
  0xdd   :  { %178 = shalt.err (!%p175_p9)
}
  0xde   :  { %80 = dma.vmem_to_hbm [thread:$0]  %s78_s8, 128, %s283_s2, [#allocation4]   ;;  %v69_v21 = vmul.f32 %v112_v20, %v40_v1 }
  0xdf   :  { %s179_s21 = scalar_lea.vmem %s88_s10, 128  ;;  %p184_p11 = scmp.lt.s32.totalorder %s88_s10, %s88_s10 }
  0xe0   :  { %70 = vst [vmem:[#allocation8] sm:$0xff] %v69_v21  ;;  %p180_p10 = scmp.ne.s32.totalorder %s88_s10, %s179_s21  ;;  %p185_p12 = scmp.lt.s32.totalorder %s179_s21, %s179_s21 }
  0xe2   :  { %p186_p13 = por %p185_p12, %p184_p11 }
  0xe4   :  { %p187_p0 = pnand %p186_p13, %p180_p10 }
  0xe6   :  { %190 = shalt.err (!%p187_p0)
}
  0xe7   :  { %s191_s24 = scalar_lea.hbm %s284_s3, 128 }
  0xe8   :  { %p192_p1 = scmp.ne.s32.totalorder %s284_s3, %s191_s24  ;;  %p195_p2 = scmp.lt.u32.totalorder %s191_s24, %s284_s3 }
  0xea   :  { %p197_p3 = pnand %p195_p2, %p192_p1 }
  0xec   :  { %200 = shalt.err (!%p197_p3)
}
  0xed   :  { %90 = dma.vmem_to_hbm [thread:$0]  %s88_s10, 128, %s284_s3, [#allocation9]  }
  0xee   :  { %205 = dma.done.wait [#allocation4], 128  }
  0xef   :  { %206 = vsyncadd [#allocation4], 4294967168 }
  0xf0   :  { %207 = dma.done.wait [#allocation9], 128  }
  0xf1   :  { %208 = vsyncadd [#allocation9], 4294967168 }
  0xf2   :  { %97 = vsyncpa [#allocation3], 1 }
  0xf3   :  { %98 = vsyncpa [#allocation6], 1 }
  0xf4   :  { %99 = vsyncpa [#allocation4], 1 }
  0xf5   :  { %100 = vsyncpa [#allocation9], 1 }

</bundles_post_ra>
